<compile_context>
chip_gen: v6e
topology: v6e:2x2x1
jax: 0.10.0
libtpu: 0.0.40
codegen_flags: <defaults>
</compile_context>

<pallas_src>
import numpy as np
import jax
import jax.numpy as jnp
from jax.experimental import pallas as pl
from jax.experimental.pallas import tpu as pltpu


# ----------------------------- GELU (exact, erf-based) -----------------------------

def _erf(x):
    # Abramowitz & Stegun 7.1.26, max abs error ~1.5e-7 (inside 1e-4/1e-5 tolerances).
    a1, a2, a3, a4, a5 = 0.254829592, -0.284496736, 1.421413741, -1.453152027, 1.061405429
    p = 0.3275911
    ax = jnp.abs(x)
    t = 1.0 / (1.0 + p * ax)
    poly = ((((a5 * t + a4) * t + a3) * t + a2) * t + a1) * t
    y = 1.0 - poly * jnp.exp(-ax * ax)
    return jnp.where(x < 0, -y, y)


def _gelu_exact(x):
    # Matches torch.nn.GELU() (erf formulation).
    return 0.5 * x * (1.0 + _erf(x * (1.0 / np.sqrt(2.0))))


# ----------------------------------- kernels ---------------------------------------

def _se_kernel_cf(x_ref, w1t_ref, w2t_ref, o_ref):
    """Channels-first layout: x block is (Bt, C, HW), spatial on lanes."""
    x = x_ref[...]                                                     # (Bt, C, HW)
    hw = x.shape[-1]
    pooled = jnp.sum(x, axis=-1) * (1.0 / hw)                          # (Bt, C)
    y1 = jnp.dot(pooled, w1t_ref[...], preferred_element_type=jnp.float32)   # (Bt, hidden)
    y1 = _gelu_exact(y1)
    y2 = jnp.dot(y1, w2t_ref[...], preferred_element_type=jnp.float32)       # (Bt, C)
    gate = jax.nn.sigmoid(y2)
    o_ref[...] = (x * gate[:, :, None]).astype(o_ref.dtype)


def _se_kernel_cl(x_ref, w1t_ref, w2t_ref, o_ref):
    """Channels-last layout: x block is (Bt, HW, C), channels on lanes."""
    x = x_ref[...]                                                     # (Bt, HW, C)
    hw = x.shape[1]
    pooled = jnp.sum(x, axis=1) * (1.0 / hw)                           # (Bt, C)
    y1 = jnp.dot(pooled, w1t_ref[...], preferred_element_type=jnp.float32)   # (Bt, hidden)
    y1 = _gelu_exact(y1)
    y2 = jnp.dot(y1, w2t_ref[...], preferred_element_type=jnp.float32)       # (Bt, C)
    gate = jax.nn.sigmoid(y2)
    o_ref[...] = (x * gate[:, None, :]).astype(o_ref.dtype)


# ----------------------------------- wrapper ----------------------------------------

def _pick_bt(B, per_batch_bytes, target_bytes=2 * 1024 * 1024):
    """Largest divisor of B with block <= target and >= 2 grid steps when B >= 2."""
    best = 1
    for bt in range(1, B + 1):
        if B % bt != 0:
            continue
        steps = B // bt
        if bt * per_batch_bytes <= target_bytes and (steps >= 2 or B < 2):
            best = bt
    return best


def se_pallas(x, w1, w2):
    """
    x  : (B, C, H, W) float32
    w1 : (hidden, C)  weight of first Linear  (nn.Linear storage layout)
    w2 : (C, hidden)  weight of second Linear
    returns (B, C, H, W) float32
    """
    B, C, H, W = x.shape
    hidden = w1.shape[0]
    HW = H * W
    itemsize = 4

    # Lane-density guard: prefer whichever of HW / C is a multiple of 128 on lanes.
    channels_last = (HW % 128 != 0) and (C % 128 == 0)

    # Pre-transpose the weights so the kernel does plain row-major batched matmuls.
    w1t = jnp.asarray(w1).T            # (C, hidden)
    w2t = jnp.asarray(w2).T            # (hidden, C)

    per_batch_bytes = C * HW * itemsize
    Bt = _pick_bt(B, per_batch_bytes)
    grid = (B // Bt,)

    # VMEM budget: in + out, double-buffered, plus resident weights (+ margin).
    block_bytes = Bt * per_batch_bytes
    weight_bytes = 2 * C * hidden * itemsize
    vmem_need = 4 * block_bytes + 2 * weight_bytes + (1 << 20)
    cp_kwargs = dict(dimension_semantics=("parallel",))
    if vmem_need > (16 << 20):                      # above v5e's scoped default
        cp_kwargs["vmem_limit_bytes"] = int(min(vmem_need, 64 << 20))
    compiler_params = pltpu.CompilerParams(**cp_kwargs)

    if channels_last:
        x2 = x.reshape(B, C, HW).transpose(0, 2, 1)             # (B, HW, C)
        kernel = _se_kernel_cl
        x_block = (Bt, HW, C)
    else:
        x2 = x.reshape(B, C, HW)                                 # (B, C, HW)
        kernel = _se_kernel_cf
        x_block = (Bt, C, HW)

    out = pl.pallas_call(
        kernel,
        out_shape=jax.ShapeDtypeStruct(x2.shape, jnp.float32),
        grid_spec=pltpu.PrefetchScalarGridSpec(
            num_scalar_prefetch=0,
            grid=grid,
            in_specs=[
                pl.BlockSpec(x_block, lambda b: (b, 0, 0)),       # x slab, Bt batches/step
                pl.BlockSpec((C, hidden), lambda b: (0, 0)),      # w1^T (resident)
                pl.BlockSpec((hidden, C), lambda b: (0, 0)),      # w2^T (resident)
            ],
            out_specs=pl.BlockSpec(x_block, lambda b: (b, 0, 0)),
        ),
        compiler_params=compiler_params,
    )(x2, w1t, w2t)

    if channels_last:
        out = out.transpose(0, 2, 1)
    return out.reshape(B, C, H, W)


# ---------------------------------- reference ----------------------------------------

def reference_se(x, w1, w2):
    """Pure-JAX reference matching the PyTorch SE.forward."""
    y = jnp.mean(x, axis=(2, 3))                       # (B, C)
    y = y @ w1.T                                       # (B, hidden)
    y = jax.nn.gelu(y, approximate=False)              # exact erf GELU == nn.GELU()
    y = y @ w2.T                                       # (B, C)
    y = jax.nn.sigmoid(y)
    return x * y[:, :, None, None]


if __name__ == "__main__":
    key = jax.random.PRNGKey(0)

    # --- Test 1: lane-dense spatial layout (HW = 256 is a multiple of 128) ---
    # SE(inp=32, oup=32, expansion=0.25) -> hidden = 8; x: (2, 32, 16, 16)
    B, inp, oup, expansion, H, W = 2, 32, 32, 0.25, 16, 16
    hidden = int(inp * expansion)
    kx, k1, k2, key = jax.random.split(key, 4)
    x = jax.random.normal(kx, (B, oup, H, W), dtype=jnp.float32)
    w1 = jax.random.normal(k1, (hidden, oup), dtype=jnp.float32) * 0.2
    w2 = jax.random.normal(k2, (oup, hidden), dtype=jnp.float32) * 0.2

    out = jax.block_until_ready(se_pallas(x, w1, w2))
    ref = jax.block_until_ready(reference_se(x, w1, w2))
    np.testing.assert_allclose(np.asarray(out), np.asarray(ref), rtol=1e-4, atol=1e-5)

    # --- Test 2: realistic SE shape, HW not a multiple of 128 -> channels-last path ---
    # SE(inp=128, oup=128, expansion=0.25) -> hidden = 32; x: (2, 128, 7, 7)
    B2, C2, H2, W2 = 2, 128, 7, 7
    hidden2 = int(C2 * 0.25)
    kx, k1, k2, key = jax.random.split(key, 4)
    x2 = jax.random.normal(kx, (B2, C2, H2, W2), dtype=jnp.float32)
    w1b = jax.random.normal(k1, (hidden2, C2), dtype=jnp.float32) * 0.1
    w2b = jax.random.normal(k2, (C2, hidden2), dtype=jnp.float32) * 0.1

    out2 = jax.block_until_ready(se_pallas(x2, w1b, w2b))
    ref2 = jax.block_until_ready(reference_se(x2, w1b, w2b))
    np.testing.assert_allclose(np.asarray(out2), np.asarray(ref2), rtol=1e-4, atol=1e-5)

    print("KERNEL_OK")
</pallas_src>

<mosaic_0001>
module attributes {stable_mosaic.version = 11 : i64} {
  func.func @_se_kernel_cf(%arg0: i32, %arg1: memref<1x32x256xf32, #tpu.memory_space<vmem>>, %arg2: memref<32x8xf32, #tpu.memory_space<vmem>>, %arg3: memref<8x32xf32, #tpu.memory_space<vmem>>, %arg4: memref<1x32x256xf32, #tpu.memory_space<vmem>>) attributes {dimension_semantics = [#tpu.dimension_semantics<parallel>], iteration_bounds = array<i64: 2>, scalar_prefetch = 0 : i64, scratch_operands = 0 : i64, tpu.core_type = #tpu.core_type<tc>, window_params = [{transform_indices = @transform_0, window_bounds = array<i64: 1, 32, 256>}, {pipeline_mode = #tpu.pipeline_mode<synchronous>, transform_indices = @transform_1, window_bounds = array<i64: 32, 8>}, {pipeline_mode = #tpu.pipeline_mode<synchronous>, transform_indices = @transform_2, window_bounds = array<i64: 8, 32>}, {transform_indices = @transform_3, window_bounds = array<i64: 1, 32, 256>}]} {
    %c0 = arith.constant 0 : index
    %c0_0 = arith.constant 0 : index
    %c0_1 = arith.constant 0 : index
    %0 = vector.load %arg1[%c0, %c0_0, %c0_1] : memref<1x32x256xf32, #tpu.memory_space<vmem>>, vector<1x32x256xf32>
    %cst = arith.constant dense<0.000000e+00> : vector<1x32xf32>
    %1 = vector.multi_reduction <add>, %0, %cst [2] : vector<1x32x256xf32> to vector<1x32xf32>
    %cst_2 = arith.constant 3.906250e-03 : f32
    %2 = vector.broadcast %cst_2 : f32 to vector<1x32xf32>
    %3 = arith.mulf %1, %2 : vector<1x32xf32>
    %c0_3 = arith.constant 0 : index
    %c0_4 = arith.constant 0 : index
    %4 = vector.load %arg2[%c0_3, %c0_4] : memref<32x8xf32, #tpu.memory_space<vmem>>, vector<32x8xf32>
    %cst_5 = arith.constant dense<0.000000e+00> : vector<1x8xf32>
    %5 = tpu.matmul %3, %4, %cst_5 {dimension_numbers = #tpu.dot_dimension_numbers<[1], [0], [0], [1], [0, 0, 1, 1], [], []>} : vector<1x32xf32>, vector<32x8xf32>, vector<1x8xf32> -> vector<1x8xf32>
    %cst_6 = arith.constant 5.000000e-01 : f32
    %6 = vector.broadcast %cst_6 : f32 to vector<1x8xf32>
    %7 = arith.mulf %6, %5 : vector<1x8xf32>
    %cst_7 = arith.constant 0.707106769 : f32
    %8 = vector.broadcast %cst_7 : f32 to vector<1x8xf32>
    %9 = arith.mulf %5, %8 : vector<1x8xf32>
    %10 = math.absf %9 : vector<1x8xf32>
    %cst_8 = arith.constant 0.327591091 : f32
    %11 = vector.broadcast %cst_8 : f32 to vector<1x8xf32>
    %12 = arith.mulf %11, %10 : vector<1x8xf32>
    %cst_9 = arith.constant 1.000000e+00 : f32
    %13 = vector.broadcast %cst_9 : f32 to vector<1x8xf32>
    %14 = arith.addf %13, %12 : vector<1x8xf32>
    %cst_10 = arith.constant 1.000000e+00 : f32
    %15 = vector.broadcast %cst_10 : f32 to vector<1x8xf32>
    %16 = arith.divf %15, %14 : vector<1x8xf32>
    %cst_11 = arith.constant 1.06140542 : f32
    %17 = vector.broadcast %cst_11 : f32 to vector<1x8xf32>
    %18 = arith.mulf %17, %16 : vector<1x8xf32>
    %cst_12 = arith.constant -1.45315206 : f32
    %19 = vector.broadcast %cst_12 : f32 to vector<1x8xf32>
    %20 = arith.addf %18, %19 : vector<1x8xf32>
    %21 = arith.mulf %20, %16 : vector<1x8xf32>
    %cst_13 = arith.constant 1.42141378 : f32
    %22 = vector.broadcast %cst_13 : f32 to vector<1x8xf32>
    %23 = arith.addf %21, %22 : vector<1x8xf32>
    %24 = arith.mulf %23, %16 : vector<1x8xf32>
    %cst_14 = arith.constant -0.284496725 : f32
    %25 = vector.broadcast %cst_14 : f32 to vector<1x8xf32>
    %26 = arith.addf %24, %25 : vector<1x8xf32>
    %27 = arith.mulf %26, %16 : vector<1x8xf32>
    %cst_15 = arith.constant 0.254829586 : f32
    %28 = vector.broadcast %cst_15 : f32 to vector<1x8xf32>
    %29 = arith.addf %27, %28 : vector<1x8xf32>
    %30 = arith.mulf %29, %16 : vector<1x8xf32>
    %cst_16 = arith.constant 0.000000e+00 : f32
    %31 = vector.broadcast %cst_16 : f32 to vector<1x8xf32>
    %32 = arith.subf %31, %10 : vector<1x8xf32>
    %33 = arith.mulf %32, %10 : vector<1x8xf32>
    %34 = math.exp %33 : vector<1x8xf32>
    %35 = arith.mulf %30, %34 : vector<1x8xf32>
    %cst_17 = arith.constant 1.000000e+00 : f32
    %36 = vector.broadcast %cst_17 : f32 to vector<1x8xf32>
    %37 = arith.subf %36, %35 : vector<1x8xf32>
    %cst_18 = arith.constant 0.000000e+00 : f32
    %38 = vector.broadcast %cst_18 : f32 to vector<1x8xf32>
    %39 = arith.cmpf olt, %9, %38 : vector<1x8xf32>
    %cst_19 = arith.constant 0.000000e+00 : f32
    %40 = vector.broadcast %cst_19 : f32 to vector<1x8xf32>
    %41 = arith.subf %40, %37 : vector<1x8xf32>
    %42 = arith.select %39, %41, %37 : vector<1x8xi1>, vector<1x8xf32>
    %cst_20 = arith.constant 1.000000e+00 : f32
    %43 = vector.broadcast %cst_20 : f32 to vector<1x8xf32>
    %44 = arith.addf %43, %42 : vector<1x8xf32>
    %45 = arith.mulf %7, %44 : vector<1x8xf32>
    %c0_21 = arith.constant 0 : index
    %c0_22 = arith.constant 0 : index
    %46 = vector.load %arg3[%c0_21, %c0_22] : memref<8x32xf32, #tpu.memory_space<vmem>>, vector<8x32xf32>
    %cst_23 = arith.constant dense<0.000000e+00> : vector<1x32xf32>
    %47 = tpu.matmul %45, %46, %cst_23 {dimension_numbers = #tpu.dot_dimension_numbers<[1], [0], [0], [1], [0, 0, 1, 1], [], []>} : vector<1x8xf32>, vector<8x32xf32>, vector<1x32xf32> -> vector<1x32xf32>
    %48 = arith.negf %47 : vector<1x32xf32>
    %49 = math.exp %48 : vector<1x32xf32>
    %cst_24 = arith.constant 1.000000e+00 : f32
    %50 = vector.broadcast %cst_24 : f32 to vector<1x32xf32>
    %51 = arith.addf %50, %49 : vector<1x32xf32>
    %52 = arith.divf %50, %51 : vector<1x32xf32>
    %53 = vector.shape_cast %52 : vector<1x32xf32> to vector<1x32x1xf32>
    %54 = vector.broadcast %53 : vector<1x32x1xf32> to vector<1x32x256xf32>
    %55 = arith.mulf %0, %54 : vector<1x32x256xf32>
    %c0_25 = arith.constant 0 : index
    %c0_26 = arith.constant 0 : index
    %c0_27 = arith.constant 0 : index
    %56 = vector.load %arg4[%c0_25, %c0_26, %c0_27] : memref<1x32x256xf32, #tpu.memory_space<vmem>>, vector<1x32x256xf32>
    tpu.vector_store %arg4[%c0_25, %c0_26, %c0_27], %55 {strides = array<i32>} : memref<1x32x256xf32, #tpu.memory_space<vmem>>, vector<1x32x256xf32>,
    return
  }
  func.func @transform_0(%arg0: i32) -> (i32, i32, i32) {
    %c0_i32 = arith.constant 0 : i32
    %c0_i32_0 = arith.constant 0 : i32
    %c0_i32_1 = arith.constant 0 : i32
    return %arg0, %c0_i32, %c0_i32_0 : i32, i32, i32
  }
  func.func @transform_1(%arg0: i32) -> (i32, i32) {
    %c0_i32 = arith.constant 0 : i32
    %c0_i32_0 = arith.constant 0 : i32
    %c0_i32_1 = arith.constant 0 : i32
    return %c0_i32, %c0_i32_0 : i32, i32
  }
  func.func @transform_2(%arg0: i32) -> (i32, i32) {
    %c0_i32 = arith.constant 0 : i32
    %c0_i32_0 = arith.constant 0 : i32
    %c0_i32_1 = arith.constant 0 : i32
    return %c0_i32, %c0_i32_0 : i32, i32
  }
  func.func @transform_3(%arg0: i32) -> (i32, i32, i32) {
    %c0_i32 = arith.constant 0 : i32
    %c0_i32_0 = arith.constant 0 : i32
    %c0_i32_1 = arith.constant 0 : i32
    return %arg0, %c0_i32, %c0_i32_0 : i32, i32, i32
  }
}

</mosaic_0001>

<bundles_post_ra>
// kernel: tpu_custom_call.1
= control target key start
LH: loop header
LB: loop body
LE: loop exit
PB: predicated region body
PF: predicated region fallthrough
CT: control target
= control target key end

     0   :  { %8 = vsyncpa [#allocation3], 0  ;;  %s987_s0 = inlined_call_operand.hbm [shape: f32[2,32,256], index: 0, kind: input, shape index: {}]   ;;  %s988_s1 = inlined_call_operand.vmem [shape: f32[32,8], index: 1, kind: input, shape index: {}]   ;;  %s989_s2 = inlined_call_operand.vmem [shape: f32[8,32], index: 2, kind: input, shape index: {}]   ;;  %s990_s3 = inlined_call_operand.hbm [shape: f32[2,32,256], index: 3, kind: output, shape index: {}]  }
   0x1   :  { %10 = vsyncpa [#allocation3 + $0x1], 0 }
   0x2   :  { %11 = vsyncpa [#allocation4], 0 }
   0x3   :  { %13 = vsyncpa [#allocation4 + $0x1], 0  ;;  %s775_s12 = smov 0   ;;  %s777_s13 = smov 0  }
   0x4   :  { %s779_s14 = smov 0   ;;  %s781_s15 = smov 0  }
   0x5 LB: > { %s796_s16 = sadd.s32 4294967295, %s745_s15   ;;  %s551_s17 = sadd.s32 4294967294, %s745_s15   ;;  %s745_s15 = sphi %s781_s15, %s1005_s15   ;;  %s741_s14 = sphi %s779_s14, %s1004_s14   ;;  %s737_s13 = sphi %s777_s13, %s1003_s13   ;;  %s733_s12 = sphi %s775_s12, %s1002_s12  }
   0x6   : > { %s800_s18 = sadd.s32 1, %s745_s15   ;;  %s26_s19 = sadd.s32 1, %s741_s14 }
   0x7   : > { %s23_s20 = ssub.s32 %s745_s15, %s800_s18  ;;  %p33_p0 = scmp.ne.s32.totalorder %s741_s14, %s737_s13 }
   0x8   : > { %p24_p1 = scmp.eq.s32.totalorder %s23_s20, 0  ;;  %p34_p2 = scmp.eq.s32.totalorder %s745_s15, 0 }
   0x9   : > { %p39_p3 = scmp.ne.s32.totalorder %s737_s13, %s733_s12  ;;  %p40_p4 = scmp.eq.s32.totalorder %s796_s16, 0 }
   0xa   : > { %s812_s21 = scalar_select %p24_p1, %s741_s14, %s26_s19  }
   0xb   : > { %p814_p5 = por %p34_p2, %p33_p0  ;;  %p818_p6 = por %p40_p4, %p39_p3 }
   0xc   : > { %p105_p7 = scmp.eq.s32.totalorder %s796_s16, 1  ;;  %p111_p8 = scmp.eq.s32.totalorder %s551_s17, 1 }
   0xd   : > { %s994_s23 = scalar_select %p818_p6, 1, 0 }
   0xe   : > { %p605_p10 = scmp.lt.s32.totalorder %s745_s15, 2  ;;  %p825_p11 = por %p105_p7, %p33_p0 }
   0xf   : > { %p829_p12 = por %p111_p8, %p39_p3  ;;  %s137_s26 = sand.u32 1, %s741_s14  }
  0x10   : > { %s995_s24 = scalar_select %p825_p11, 1, 0 }
  0x11   : > { %s996_s25 = scalar_select %p829_p12, 1, 0 }
  0x12   : > { %s568_s27 = sshll.u32 %s745_s15, 10  ;;  %s554_s28 = sshll.u32 %s137_s26, 6 }
  0x13   : > { %s838_s4 = scalar_lea.hbm %s987_s0, %s568_s27  ;;  %s141_s5 = scalar_lea.vmem [#allocation2], %s554_s28 }
  0x14   : > { %s148_s6 = sshll.u32 %s141_s5, 4  ;;  %p842_p13 = pnand %p605_p10, %p814_p5  ;;  %s846_s6 = int_to_ptr.vmem [resolvable:$true] %s148_s6 }
  0x15   : > { %s848_s8 = scalar_lea.sflag [#allocation3], %s137_s26  ;;  %s653_s9 = scalar_lea.hbm %s838_s4, 1024 }
  0x16   : > { %p654_p0 = scmp.ne.s32.totalorder %s838_s4, %s653_s9  ;;  %p655_p1 = pneg %p842_p13 }
  0x17   : > { %s658_s17 = scalar_lea.hbm %s987_s0, 2048  ;;  %p659_p4 = scmp.lt.s32.totalorder %s838_s4, %s987_s0 }
  0x18   : > { %p656_p2 = pnand %p655_p1, %p654_p0  ;;  %p660_p5 = scmp.lt.s32.totalorder %s658_s17, %s653_s9 }
  0x1a   : > { %p657_p3 = pneg %p656_p2  ;;  %p661_p7 = por %p660_p5, %p659_p4 }
  0x1c   : > { %p662_p8 = pnand %p661_p7, %p657_p3 }
  0x1e   : > { %665 = shalt.err (!%p662_p8)
}
  0x1f   : > { %s666_s22 = scalar_lea.vmem %s846_s6, 1024  ;;  %s747_s26 = smov [#allocation2]  }
  0x20   : > { %p667_p10 = scmp.ne.s32.totalorder %s846_s6, %s666_s22  ;;  %s671_s27 = sshll.u32 %s747_s26, 4  ;;  %s672_s27 = int_to_ptr.vmem [resolvable:$false] %s671_s27 }
  0x21   : > { %s673_s28 = scalar_lea.vmem %s672_s27, 2048  ;;  %p674_p2 = scmp.lt.s32.totalorder %s846_s6, %s672_s27 }
  0x22   : > { %p669_p9 = pnand %p667_p10, %p655_p1  ;;  %p675_p12 = scmp.lt.s32.totalorder %s673_s28, %s666_s22 }
  0x24   : > { %p670_p0 = pneg %p669_p9  ;;  %p676_p11 = por %p675_p12, %p674_p2 }
  0x26   : > { %p677_p6 = pnand %p676_p11, %p670_p0 }
  0x28   : > { %680 = shalt.err (!%p677_p6)
}
  0x29   : > { %s748_s29 = smov 256   ;;  %s749_s30 = smov 16  }
  0x2a   : > { %600 = dma.hbm_to_vmem [thread:$0]  (!%p842_p13), %s838_s4, 1024, %s846_s6, %s848_s8, %s748_s29, %s748_s29, %s749_s30  }
  0x2b   : > { %p557_p9 = scmp.ge.s32.totalorder %s745_s15, 1  ;;  %p156_p1 = scmp.lt.s32.totalorder %s745_s15, 3 }
  0x2d   : > { %p157_p3 = pnand %p557_p9, %p156_p1 }
  0x2e   : > { %s872_s5 = sand.u32 (!%p157_p3), 1, %s737_s13   ;;  %p998_p6 = scmp.ne.s32.totalorder (!%p157_p3), %s994_s23, 0 }
  0x2f   : > { %160 = sbr.rel (%p157_p3) target bundleno = 815 (0x32f), region = 32  ;;  %s558_s9 = sshll.u32 (!%p157_p3), %s872_s5, 6 }
  0x30   : > { %s163_s10 = scalar_lea.sflag (!%p157_p3), [#allocation3], %s872_s5  ;;  %s166_s11 = scalar_lea.vmem (!%p157_p3), [#allocation2], %s558_s9 }
  0x34   : > { %724 = dma.done.wait (%p998_p6), %s163_s10, 1024  }
  0x35   : > { %726 = vsyncadd (%p998_p6), %s163_s10, 4294966272  ;;  %v882_v0 = vld [vmem:[%s166_s11] sm:$0xff]  ;;  %v884_v1 = vld [vmem:[%s166_s11 + $0x8] sm:$0xff]  ;;  %v750_v12 = vmov 0.0   ;;  %vm751_vm0 = vmmov 0   ;;  %v221_v17 = vlaneseq  ;;  %vm232_vm1 = vcmask 130112  }
  0x36   : > { %v886_v2 = vld [vmem:[%s166_s11 + $0x20] sm:$0xff]  ;;  %v197_v3 = vadd.f32 %v884_v1, %v882_v0  ;;  %v890_v4 = vld [vmem:[%s166_s11 + $0x28] sm:$0xff]  ;;  %v892_v5 = vld [vmem:[%s166_s11 + $0x10] sm:$0xff]  ;;  %577 = vmatprep.subr.mxu0 %v750_v12  ;;  %588 = vmatprep.subr.mxu1 %v750_v12  ;;  %vm239_vm2 = vcmask 195712   ;;  %vm246_vm3 = vcmask 261312   ;;  %vm248_vm4 = vcmask 261120  }
  0x37   : > { %v894_v6 = vld [vmem:[%s166_s11 + $0x18] sm:$0xff]  ;;  %v203_v7 = vadd.f32 %v890_v4, %v886_v2  ;;  %v898_v8 = vld [vmem:[%s166_s11 + $0x30] sm:$0xff]  ;;  %v214_v15 = vld [vmem:[%s988_s1 + $0x8] sm:$0xff]  ;;  %585 = vmatprep.mubr.msk.f32.mxu0 %vm751_vm0, %v750_v12  ;;  %590 = vmatprep.mubr.msk.f32.mxu1 %vm751_vm0, %v750_v12  ;;  %v222_v18 = vand.u32 127, %v221_v17  ;;  %v918_v19 = vshrl.u32 %v221_v17, 7  ;;  %vm349_vm6 = vcmask 64512  }
  0x38   : > { %v900_v9 = vld [vmem:[%s166_s11 + $0x38] sm:$0xff]  ;;  %198 = vadd.xlane.f32.xlu0 %v197_v3  ;;  %v200_v10 = vadd.f32 %v894_v6, %v892_v5  ;;  %v215_v14 = vld [vmem:[%s988_s1 + $0x10] sm:$0xff]  ;;  %v213_v16 = vld [vmem:[%s988_s1] sm:$0xff]  ;;  %s188_s27 = scalar_lea.vmem [#allocation5], %s558_s9  ;;  %s569_s29 = sshll.u32 %s796_s16, 10 }
  0x39   : > { %204 = vadd.xlane.f32.xlu1 %v203_v7  ;;  %v206_v11 = vadd.f32 %v900_v9, %v898_v8  ;;  %v216_v13 = vld [vmem:[%s988_s1 + $0x18] sm:$0xff]  ;;  %v227_v20 = vadd.s32 4294967288, %v222_v18  ;;  %v234_v22 = vadd.s32 4294967280, %v222_v18  ;;  %v241_v23 = vadd.s32 4294967272, %v222_v18  ;;  %v348_v42 = vld [vmem:[%s989_s2] sm:$0xff]  ;;  %s478_s28 = sshll.u32 %s188_s27, 4  ;;  %s942_s10 = scalar_lea.hbm %s990_s3, %s569_s29  ;;  %s937_s28 = int_to_ptr.vmem [resolvable:$true] %s478_s28 }
  0x3a   : > { %578 = vmatpush3.msra.mxu0 %v216_v13  ;;  %v225_v25 = vsub.s32 %v222_v18, %v918_v19  ;;  %589 = vmatpush3.msra.mxu1 %v348_v42  ;;  %s465_s16 = scalar_lea.sflag [#allocation4], %s872_s5  ;;  %s681_s11 = scalar_lea.vmem %s937_s28, 1024 }
  0x3b   : > { %579 = vmatprep.subr.mxu0 %v750_v12  ;;  %v230_v27 = vsub.s32 %v227_v20, %v918_v19  ;;  %v237_v28 = vsub.s32 %v234_v22, %v918_v19  ;;  %v244_v31 = vsub.s32 %v241_v23, %v918_v19  ;;  %v431_v20 = vsub.s32 0, %v918_v19  ;;  %p682_p11 = scmp.ne.s32.totalorder %s937_s28, %s681_s11  ;;  %p999_p12 = scmp.ne.s32.totalorder %s995_s24, 0 }
  0x3c   : > { %201 = vadd.xlane.f32.xlu0 %v200_v10  ;;  %580 = vmatpush3.msra.mxu0 %v215_v14  ;;  %s752_s23 = smov [#allocation5]  }
  0x3d   : > { %207 = vadd.xlane.f32.xlu1 %v206_v11  ;;  %581 = vmatprep.subr.mxu0 %v750_v12  ;;  %p683_p13 = pnand %p682_p11, %p999_p12  ;;  %s685_s4 = sshll.u32 %s752_s23, 4  ;;  %s686_s4 = int_to_ptr.vmem [resolvable:$false] %s685_s4 }
  0x3e   : > { %582 = vmatpush3.msra.mxu0 %v214_v15  ;;  %s687_s6 = scalar_lea.vmem %s686_s4, 2048  ;;  %p688_p5 = scmp.lt.s32.totalorder %s937_s28, %s686_s4 }
  0x3f   : > { %583 = vmatprep.subr.mxu0 %v750_v12  ;;  %p684_p4 = pneg %p683_p13  ;;  %p689_p7 = scmp.lt.s32.totalorder %s687_s6, %s681_s11 }
  0x40   : > { %584 = vmatpush3.msra.mxu0 %v213_v16 }
  0x41   : > { %p690_p8 = por %p689_p7, %p688_p5 }
  0x43   : > { %p691_p10 = pnand %p690_p8, %p684_p4 }
  0xc1   : > { %v199_v21 = vpop.xlane.xlu0 %198 }
  0xc2   : > { %v205_v24 = vpop.xlane.xlu1 %204  ;;  %v209_v26 = vmul.f32 0.00390625, %v199_v21 }
  0xc3   : > { %v211_v29 = vmul.f32 0.00390625, %v205_v24 }
  0xc4   : > { %v226_v35 = vrot.slane %v209_v26, %v225_v25 }
  0xc5   : > { %v202_v30 = vpop.xlane.xlu0 %201  ;;  %v238_v37 = vrot.slane %v211_v29, %v237_v28 }
  0xc6   : > { %v210_v32 = vmul.f32 0.00390625, %v202_v30  ;;  %v208_v33 = vpop.xlane.xlu1 %207 }
  0xc7   : > { %v212_v34 = vmul.f32 0.00390625, %v208_v33 }
  0xc8   : > { %v231_v36 = vrot.slane %v210_v32, %v230_v27 }
  0xc9   : > { %v245_v38 = vrot.slane %v212_v34, %v244_v31 }
  0xca   : > { %v233_v39 = vsel %vm232_vm1, %v231_v36, %v226_v35 }
  0xcb   : > { %v240_v40 = vsel %vm239_vm2, %v238_v37, %v233_v39 }
  0xcc   : > { %v247_v41 = vsel %vm246_vm3, %v245_v38, %v240_v40 }
  0xcd   : > { %586 = vmatmul.mubr.msk.f32.vlgmr.msra.gmra.mxu0 %vm248_vm4, %v247_v41 }
 0x18d   : > { %v317_v43 = vpop.f32.mrf.mxu0 }
 0x18e   : > { %v322_v44 = vmul.f32 0.70710677, %v317_v43  ;;  %v321_v11 = vmul.f32 0.5, %v317_v43 }
 0x18f   : > { %v587_v45 = vpop.f32.mrf.mxu0 }
 0x190   : > { %v323_v46 = vand.u32 2147483647, %v322_v44  ;;  %vm343_vm5 = vcmp.lt.f32.partialorder %v322_v44, 0.0 }
 0x192   : > { %v324_v47 = vmul.f32 0.3275911, %v323_v46  ;;  %v337_v49 = vsub.f32 0.0, %v323_v46 }
 0x194   : > { %v325_v48 = vadd.f32 1.0, %v324_v47  ;;  %v338_v50 = vmul.f32 %v337_v49, %v323_v46 }
 0x196   : > { %645 = vrcp.f32 %v325_v48  ;;  %v339_v53 = vmul.f32 1.442695, %v338_v50 }
 0x198   : > { %647 = vpow2.f32 %v339_v53 }
 0x1a3   : > { %v646_v51 = vpop.eup %645 }
 0x1a4   : > { %v328_v52 = vmul.f32 1.0614054, %v646_v51 }
 0x1a5   : > { %v648_v62 = vpop.eup %647 }
 0x1a6   : > { %v329_v54 = vadd.f32 -1.4531521, %v328_v52 }
 0x1a8   : > { %v330_v55 = vmul.f32 %v646_v51, %v329_v54 }
 0x1aa   : > { %v331_v56 = vadd.f32 1.4214138, %v330_v55 }
 0x1ac   : > { %v332_v57 = vmul.f32 %v646_v51, %v331_v56 }
 0x1ae   : > { %v333_v58 = vadd.f32 -0.28449672, %v332_v57 }
 0x1b0   : > { %v334_v59 = vmul.f32 %v646_v51, %v333_v58 }
 0x1b2   : > { %v335_v60 = vadd.f32 0.2548296, %v334_v59 }
 0x1b4   : > { %v336_v61 = vmul.f32 %v646_v51, %v335_v60 }
 0x1b6   : > { %v341_v63 = vmul.f32 %v648_v62, %v336_v61 }
 0x1b8   : > { %v342_v3 = vsub.f32 1.0, %v341_v63 }
 0x1ba   : > { %v344_v7 = vsub.f32 0.0, %v342_v3 }
 0x1bc   : > { %v345_v10 = vsel %vm343_vm5, %v344_v7, %v342_v3 }
 0x1bd   : > { %v346_v12 = vadd.f32 1.0, %v345_v10 }
 0x1bf   : > { %v347_v13 = vmul.f32 %v346_v12, %v321_v11 }
 0x1c1   : > { %591 = vmatmul.mubr.msk.f32.vlgmr.msra.gmra.mxu1 %vm349_vm6, %v347_v13 }
 0x281   : > { %v419_v14 = vpop.f32.mrf.mxu1 }
 0x282   : > { %v562_v15 = vmul.f32 -1.442695, %v419_v14 }
 0x283   : > { %v592_v16 = vpop.f32.mrf.mxu1 }
 0x284   : > { %649 = vpow2.f32 %v562_v15 }
 0x291   : > { %v650_v17 = vpop.eup %649 }
 0x292   : > { %v426_v18 = vadd.f32 1.0, %v650_v17 }
 0x294   : > { %651 = vrcp.f32 %v426_v18 }
 0x2a1   : > { %v652_v21 = vpop.eup %651 }
 0x2a2   : > { %v432_v22 = vrot.slane %v652_v21, %v431_v20 }
 0x2a4   : > { %438 = vbcast.lane.b32.xlu1 %v432_v22, 264  ;;  %434 = vbcast.lane.b32.xlu0 %v432_v22, 256 }
 0x2a8   : > { %442 = vbcast.lane.b32.xlu1 %v432_v22, 272 }
 0x2ac   : > { %446 = vbcast.lane.b32.xlu1 %v432_v22, 280 }
 0x316   : > { %v439_v23 = vpop.permute.xlu1 %438  ;;  %v435_v24 = vpop.permute.xlu0 %434 }
 0x317   : > { %v450_v25 = vmul.f32 %v439_v23, %v892_v5  ;;  %v451_v26 = vmul.f32 %v439_v23, %v894_v6  ;;  %v448_v27 = vmul.f32 %v435_v24, %v882_v0  ;;  %v449_v28 = vmul.f32 %v435_v24, %v884_v1 }
 0x319   : > { %458 = vst [vmem:[%s188_s27 + $0x10] sm:$0xff] %v450_v25  ;;  %459 = vst [vmem:[%s188_s27 + $0x18] sm:$0xff] %v451_v26 }
 0x31a   : > { %456 = vst [vmem:[%s188_s27] sm:$0xff] %v448_v27  ;;  %457 = vst [vmem:[%s188_s27 + $0x8] sm:$0xff] %v449_v28  ;;  %v443_v19 = vpop.permute.xlu1 %442 }
 0x31b   : > { %v452_v29 = vmul.f32 %v443_v19, %v886_v2  ;;  %v453_v5 = vmul.f32 %v443_v19, %v890_v4 }
 0x31d   : > { %460 = vst [vmem:[%s188_s27 + $0x20] sm:$0xff] %v452_v29  ;;  %461 = vst [vmem:[%s188_s27 + $0x28] sm:$0xff] %v453_v5 }
 0x31e   : > { %v447_v0 = vpop.permute.xlu1 %446 }
 0x31f   : > { %v454_v1 = vmul.f32 %v447_v0, %v898_v8  ;;  %v455_v2 = vmul.f32 %v447_v0, %v900_v9 }
 0x321   : > { %462 = vst [vmem:[%s188_s27 + $0x30] sm:$0xff] %v454_v1  ;;  %463 = vst [vmem:[%s188_s27 + $0x38] sm:$0xff] %v455_v2 }
 0x322   : > { %694 = shalt.err (!%p691_p10)
}
 0x323   : > { %s695_s7 = scalar_lea.hbm %s942_s10, 1024  ;;  %s699_s19 = scalar_lea.hbm %s990_s3, 2048 }
 0x324   : > { %p696_p0 = scmp.ne.s32.totalorder %s942_s10, %s695_s7  ;;  %p700_p1 = scmp.lt.s32.totalorder %s942_s10, %s990_s3 }
 0x325   : > { %p701_p3 = scmp.lt.s32.totalorder %s699_s19, %s695_s7 }
 0x326   : > { %p697_p2 = pnand %p696_p0, %p999_p12 }
 0x327   : > { %p702_p6 = por %p701_p3, %p700_p1 }
 0x328   : > { %p698_p9 = pneg %p697_p2 }
 0x32a   : > { %p703_p11 = pnand %p702_p6, %p698_p9 }
 0x32c   : > { %706 = shalt.err (!%p703_p11)
}
 0x32d   : > { %s753_s26 = smov 256   ;;  %s754_s27 = smov 16  }
 0x32e   : > { %595 = dma.vmem_to_hbm [thread:$0]  (%p999_p12), %s937_s28, 1024, %s942_s10, %s465_s16, %s753_s26, %s753_s26, %s754_s27  }
 0x32f PF: > { %s493_s29 = sand.u32 1, %s733_s12   ;;  %p1000_p13 = scmp.ne.s32.totalorder %s996_s25, 0 }
 0x330   : > { %p1001_p4 = scmp.ge.s32.totalorder %s745_s15, 2  ;;  %s494_s30 = scalar_lea.sflag [#allocation4], %s493_s29 }
 0x332   : > { %p602_p5 = pnand %p1001_p4, %p1000_p13 }
 0x334   : > { %p603_p7 = pneg %p602_p5 }
 0x336   : > { %728 = dma.done.wait (%p603_p7), %s494_s30, 1024  }
 0x337   : > { %730 = vsyncadd (%p603_p7), %s494_s30, 4294966272  ;;  %p16_p8 = scmp.ge.s32.totalorder %s800_s18, 4   ;;  %s1002_s12 = smov %s737_s13 }
 0x338   : > { %s1003_s13 = smov %s741_s14  ;;  %s1004_s14 = smov %s812_s21 }
 0x339   : > { %s1005_s15 = smov %s800_s18  ;;  %18 = sbr.rel (!%p16_p8) target bundleno = 5 (0x5), region = 77 }
 0x33e   :  { %499 = vsyncpa [#allocation3], 1 }
 0x33f   :  { %501 = vsyncpa [#allocation3 + $0x1], 1 }
 0x340   :  { %502 = vsyncpa [#allocation4], 1 }
 0x341   :  { %504 = vsyncpa [#allocation4 + $0x1], 1 }

</bundles_post_ra>
